<compile_context>
chip_gen: v5e
topology: v5e:2x2
jax: 0.10.0
libtpu: 0.0.40
codegen_flags: <defaults>
</compile_context>

<pallas_src>
import functools
import math

import jax
import jax.numpy as jnp
from jax.experimental import pallas as pl
from jax.experimental.pallas import tpu as pltpu

LANE = 128
SUBLANE = 8
# Explicit scoped-VMEM budget: safe on v5e/v6e (128 MiB) and v7x (64 MiB).
VMEM_LIMIT_BYTES = 32 * 1024 * 1024


def _round_up(x, m):
    return ((x + m - 1) // m) * m


def _pad2d(a, rows, cols):
    r, c = a.shape
    if (r, c) == (rows, cols):
        return a
    return jnp.pad(a, ((0, rows - r), (0, cols - c)))


def _pick_row_tile(m_pad, per_row_in_bytes, per_row_out_bytes, resident_bytes,
                   vmem_budget=VMEM_LIMIT_BYTES):
    """Largest row tile (multiple of 8, prefer >=128) fitting the VMEM budget."""
    budget = int(vmem_budget * 0.75)  # headroom for compiler scratch
    for tm in (1024, 512, 256, 128, 64, 32, 16, 8):
        if tm > m_pad or m_pad % tm != 0:
            continue
        # streamed input + output are double-buffered; resident operands x2 too.
        need = 2 * tm * (per_row_in_bytes + per_row_out_bytes) + 2 * resident_bytes
        if need <= budget:
            return tm
    return SUBLANE


def _activate(y, act):
    if act == "tanh":
        return jnp.tanh(y)       # EUP
    if act == "relu":
        return jnp.maximum(y, 0.0)
    return y                     # identity


# ---------------------------------------------------------------------------
# Kernels
# ---------------------------------------------------------------------------
def _linear_kernel(x_ref, w_ref, b_ref, o_ref, *, act):
    # y = x_block @ W + b   (MXU, f32 accumulate)
    y = jnp.dot(x_ref[...], w_ref[...], preferred_element_type=jnp.float32)
    y = y + b_ref[...].astype(jnp.float32)
    o_ref[...] = _activate(y, act).astype(o_ref.dtype)


def _aggregate_kernel(adj_ref, s_ref, o_ref, *, act):
    # y = adj_row_block @ support   (MXU, f32 accumulate), then activation.
    y = jnp.dot(adj_ref[...], s_ref[...], preferred_element_type=jnp.float32)
    o_ref[...] = _activate(y, act).astype(o_ref.dtype)


# ---------------------------------------------------------------------------
# Pallas wrappers (operate on already-padded 2D operands, return padded f32)
# ---------------------------------------------------------------------------
def _linear_padded(x_p, w_p, b_p, act="none"):
    m_p, k_p = x_p.shape
    k_p2, n_p = w_p.shape
    assert k_p == k_p2 and b_p.shape == (1, n_p)

    tm = _pick_row_tile(
        m_p,
        per_row_in_bytes=k_p * x_p.dtype.itemsize,
        per_row_out_bytes=n_p * 4,
        resident_bytes=k_p * n_p * w_p.dtype.itemsize + n_p * 4)

    flops = 2 * m_p * k_p * n_p
    trans = m_p * n_p if act == "tanh" else 0
    bytes_acc = (m_p * k_p * x_p.dtype.itemsize
                 + k_p * n_p * w_p.dtype.itemsize
                 + n_p * 4 + m_p * n_p * 4)

    return pl.pallas_call(
        functools.partial(_linear_kernel, act=act),
        out_shape=jax.ShapeDtypeStruct((m_p, n_p), jnp.float32),
        grid=(m_p // tm,),
        in_specs=[
            pl.BlockSpec((tm, k_p), lambda i: (i, 0)),    # x row slab (streamed)
            pl.BlockSpec((k_p, n_p), lambda i: (0, 0)),   # W (resident)
            pl.BlockSpec((1, n_p), lambda i: (0, 0)),     # bias (resident)
        ],
        out_specs=pl.BlockSpec((tm, n_p), lambda i: (i, 0)),
        compiler_params=pltpu.CompilerParams(
            dimension_semantics=("parallel",),
            vmem_limit_bytes=VMEM_LIMIT_BYTES),
        cost_estimate=pl.CostEstimate(
            flops=flops, transcendentals=trans, bytes_accessed=bytes_acc),
    )(x_p, w_p, b_p)


def _gcn_aggregate_padded(adj_p, support_p, act="tanh"):
    m_p, n_p = adj_p.shape
    n_p2, out_p = support_p.shape
    assert n_p == n_p2

    tm = _pick_row_tile(
        m_p,
        per_row_in_bytes=n_p * adj_p.dtype.itemsize,
        per_row_out_bytes=out_p * 4,
        resident_bytes=n_p * out_p * support_p.dtype.itemsize)

    flops = 2 * m_p * n_p * out_p
    trans = m_p * out_p if act == "tanh" else 0
    bytes_acc = (m_p * n_p * adj_p.dtype.itemsize
                 + n_p * out_p * support_p.dtype.itemsize
                 + m_p * out_p * 4)

    return pl.pallas_call(
        functools.partial(_aggregate_kernel, act=act),
        out_shape=jax.ShapeDtypeStruct((m_p, out_p), jnp.float32),
        grid=(m_p // tm,),
        in_specs=[
            pl.BlockSpec((tm, n_p), lambda i: (i, 0)),     # adj row slab (streamed)
            pl.BlockSpec((n_p, out_p), lambda i: (0, 0)),  # support (VMEM-resident)
        ],
        out_specs=pl.BlockSpec((tm, out_p), lambda i: (i, 0)),
        compiler_params=pltpu.CompilerParams(
            dimension_semantics=("parallel",),
            vmem_limit_bytes=VMEM_LIMIT_BYTES),
        cost_estimate=pl.CostEstimate(
            flops=flops, transcendentals=trans, bytes_accessed=bytes_acc),
    )(adj_p, support_p)


def _gcn_layer_padded(x_p, adj_p, w_p, act="tanh"):
    """One GraphConvolution on padded operands: act(adj @ (x @ W))."""
    out_p = w_p.shape[1]
    zero_bias = jnp.zeros((1, out_p), jnp.float32)
    support_p = _linear_padded(x_p, w_p, zero_bias, act="none")   # computed once
    # keep the big adj @ support matmul in the same (possibly bf16) compute dtype
    support_p = support_p.astype(adj_p.dtype)
    return _gcn_aggregate_padded(adj_p, support_p, act=act)


# ---------------------------------------------------------------------------
# CL_Model forward
# ---------------------------------------------------------------------------
def cl_model_forward(x, adj, image_encoder_emb,
                     w1, w2, w_fc, b_fc, w_image, b_image,
                     compute_dtype=jnp.float32):
    """Returns (rna_emb, hidden2_rna, None, image_emb, image_encoder_emb, None).

    Linear weights are stored as (in_features, out_features), i.e. y = x @ W + b.
    compute_dtype=jnp.bfloat16 casts the matmul operands (f32 accumulation kept)
    to halve adj DMA traffic / double MXU rate on v6e / v7x.
    """
    n, in_f = x.shape
    assert adj.shape == (n, n)
    h1, h2, emb = w1.shape[1], w2.shape[1], w_fc.shape[1]
    assert w2.shape[0] == h1 and w_fc.shape[0] == h2 and b_fc.shape == (emb,)
    b_img, feat = image_encoder_emb.shape
    assert w_image.shape == (feat, emb) and b_image.shape == (emb,)

    cd = compute_dtype

    # --- pad everything to lane-dense (x128) / sublane-aligned (x8) shapes ---
    n_p = _round_up(n, LANE)
    in_f_p = _round_up(in_f, LANE)
    h1_p = _round_up(h1, LANE)
    h2_p = _round_up(h2, LANE)
    emb_p = _round_up(emb, LANE)

    x_p = _pad2d(x, n_p, in_f_p).astype(cd)
    adj_p = _pad2d(adj, n_p, n_p).astype(cd)
    w1_p = _pad2d(w1, in_f_p, h1_p).astype(cd)
    w2_p = _pad2d(w2, h1_p, h2_p).astype(cd)
    w_fc_p = _pad2d(w_fc, h2_p, emb_p).astype(cd)
    b_fc_p = _pad2d(b_fc[None, :], 1, emb_p).astype(jnp.float32)

    # --- RNA branch: two GCN layers (act=tanh, as in CL_Model) + fc_rna ---
    hidden1_p = _gcn_layer_padded(x_p, adj_p, w1_p, act="tanh")
    hidden2_p = _gcn_layer_padded(hidden1_p.astype(cd), adj_p, w2_p, act="tanh")
    rna_emb_p = _linear_padded(hidden2_p.astype(cd), w_fc_p, b_fc_p, act="none")

    hidden2_rna = hidden2_p[:n, :h2]
    rna_emb = rna_emb_p[:n, :emb]

    # --- Image branch: fc_image on flattened backbone features ---
    # TODO(synk): image_encoder_f is an externally supplied ResNet-style CNN
    # backbone (not specified in-module); we take its flattened output
    # `image_encoder_emb` as an input and implement only fc_image here.
    b_p_rows = _round_up(b_img, SUBLANE)
    feat_p = _round_up(feat, LANE)
    img_p = _pad2d(image_encoder_emb, b_p_rows, feat_p).astype(cd)
    w_im_p = _pad2d(w_image, feat_p, emb_p).astype(cd)
    b_im_p = _pad2d(b_image[None, :], 1, emb_p).astype(jnp.float32)
    image_emb = _linear_padded(img_p, w_im_p, b_im_p, act="none")[:b_img, :emb]

    return rna_emb, hidden2_rna, None, image_emb, image_encoder_emb, None


# ---------------------------------------------------------------------------
# Demo / correctness check
# ---------------------------------------------------------------------------
def _reference(x, adj, img_feat, w1, w2, w_fc, b_fc, w_im, b_im):
    h1 = jnp.tanh(adj @ (x @ w1))
    h2 = jnp.tanh(adj @ (h1 @ w2))
    rna_emb = h2 @ w_fc + b_fc
    image_emb = img_feat @ w_im + b_im
    return rna_emb, h2, image_emb


if __name__ == "__main__":
    # Small shapes consistent with the module (exercise padding / tiling paths).
    N, IN_F = 200, 50            # nodes, input_feat_dim_rna
    H1, H2, EMB = 32, 16, 64     # gae_hidden1_dim, gae_hidden2_dim, cl_emb_dim
    B_IMG, IMG_FEAT = 4, 512     # image batch, image_encoder.fc.in_features

    key = jax.random.PRNGKey(0)
    kx, ka, k1, k2, k3, k4, kf = jax.random.split(key, 7)

    # Node features.
    x = jax.random.normal(kx, (N, IN_F), dtype=jnp.float32)

    # Symmetric, row-normalized dense adjacency (torch.spmm semantics = matmul).
    a_raw = (jax.random.uniform(ka, (N, N)) < 0.1).astype(jnp.float32)
    a_sym = jnp.maximum(a_raw, a_raw.T) + jnp.eye(N, dtype=jnp.float32)
    adj = a_sym / jnp.sum(a_sym, axis=1, keepdims=True)

    def xavier(k, fan_in, fan_out):
        limit = math.sqrt(6.0 / (fan_in + fan_out))
        return jax.random.uniform(k, (fan_in, fan_out), jnp.float32,
                                  minval=-limit, maxval=limit)

    w1 = xavier(k1, IN_F, H1)
    w2 = xavier(k2, H1, H2)
    w_fc = xavier(k3, H2, EMB)
    b_fc = jnp.zeros((EMB,), jnp.float32)
    w_im = xavier(k4, IMG_FEAT, EMB)
    b_im = jnp.zeros((EMB,), jnp.float32)

    # Flattened image-encoder features (backbone itself left as TODO above).
    img_feat = jax.random.normal(kf, (B_IMG, IMG_FEAT), dtype=jnp.float32)

    fwd = jax.jit(cl_model_forward, static_argnames=("compute_dtype",))

    # ---- f32 path ----
    outs = fwd(x, adj, img_feat, w1, w2, w_fc, b_fc, w_im, b_im,
               compute_dtype=jnp.float32)
    rna_emb, hidden2_rna, _, image_emb, image_encoder_emb, _ = outs
    jax.block_until_ready((rna_emb, hidden2_rna, image_emb))

    rna_ref, h2_ref, img_ref = _reference(x, adj, img_feat, w1, w2, w_fc, b_fc,
                                          w_im, b_im)
    assert rna_emb.shape == (N, EMB)
    assert hidden2_rna.shape == (N, H2)
    assert image_emb.shape == (B_IMG, EMB)
    assert jnp.allclose(rna_emb, rna_ref, atol=1e-4, rtol=1e-4)
    assert jnp.allclose(hidden2_rna, h2_ref, atol=1e-4, rtol=1e-4)
    assert jnp.allclose(image_emb, img_ref, atol=1e-4, rtol=1e-4)

    # ---- bf16-operand path (v6e / v7x fast path), f32 accumulation ----
    outs_bf16 = fwd(x, adj, img_feat, w1, w2, w_fc, b_fc, w_im, b_im,
                    compute_dtype=jnp.bfloat16)
    rna_bf16 = outs_bf16[0]
    img_bf16 = outs_bf16[3]
    jax.block_until_ready((rna_bf16, img_bf16))
    assert jnp.allclose(rna_bf16, rna_ref, atol=1e-1, rtol=1e-1)
    assert jnp.allclose(img_bf16, img_ref, atol=1e-1, rtol=1e-1)

    print("KERNEL_OK")
</pallas_src>

<mosaic_0001>
module attributes {stable_mosaic.version = 11 : i64} {
  func.func @_linear_kernel(%arg0: i32, %arg1: memref<256x128xf32, #tpu.memory_space<vmem>>, %arg2: memref<128x128xf32, #tpu.memory_space<vmem>>, %arg3: memref<1x128xf32, #tpu.memory_space<vmem>>, %arg4: memref<256x128xf32, #tpu.memory_space<vmem>>) attributes {dimension_semantics = [#tpu.dimension_semantics<parallel>], iteration_bounds = array<i64: 1>, scalar_prefetch = 0 : i64, scratch_operands = 0 : i64, tpu.core_type = #tpu.core_type<tc>, window_params = [{transform_indices = @transform_0, window_bounds = array<i64: 256, 128>}, {pipeline_mode = #tpu.pipeline_mode<synchronous>, transform_indices = @transform_1, window_bounds = array<i64: 128, 128>}, {pipeline_mode = #tpu.pipeline_mode<synchronous>, transform_indices = @transform_2, window_bounds = array<i64: 1, 128>}, {transform_indices = @transform_3, window_bounds = array<i64: 256, 128>}]} {
    %c0 = arith.constant 0 : index
    %c0_0 = arith.constant 0 : index
    %0 = vector.load %arg1[%c0, %c0_0] : memref<256x128xf32, #tpu.memory_space<vmem>>, vector<256x128xf32>
    %c0_1 = arith.constant 0 : index
    %c0_2 = arith.constant 0 : index
    %1 = vector.load %arg2[%c0_1, %c0_2] : memref<128x128xf32, #tpu.memory_space<vmem>>, vector<128x128xf32>
    %cst = arith.constant dense<0.000000e+00> : vector<256x128xf32>
    %2 = tpu.matmul %0, %1, %cst {dimension_numbers = #tpu.dot_dimension_numbers<[1], [0], [0], [1], [0, 0, 1, 1], [], []>} : vector<256x128xf32>, vector<128x128xf32>, vector<256x128xf32> -> vector<256x128xf32>
    %c0_3 = arith.constant 0 : index
    %c0_4 = arith.constant 0 : index
    %3 = vector.load %arg3[%c0_3, %c0_4] : memref<1x128xf32, #tpu.memory_space<vmem>>, vector<1x128xf32>
    %4 = vector.broadcast %3 : vector<1x128xf32> to vector<256x128xf32>
    %5 = arith.addf %2, %4 : vector<256x128xf32>
    %c0_5 = arith.constant 0 : index
    %c0_6 = arith.constant 0 : index
    %6 = vector.load %arg4[%c0_5, %c0_6] : memref<256x128xf32, #tpu.memory_space<vmem>>, vector<256x128xf32>
    tpu.vector_store %arg4[%c0_5, %c0_6], %5 {strides = array<i32>} : memref<256x128xf32, #tpu.memory_space<vmem>>, vector<256x128xf32>,
    return
  }
  func.func @transform_0(%arg0: i32) -> (i32, i32) {
    %c0_i32 = arith.constant 0 : i32
    %c0_i32_0 = arith.constant 0 : i32
    return %arg0, %c0_i32 : i32, i32
  }
  func.func @transform_1(%arg0: i32) -> (i32, i32) {
    %c0_i32 = arith.constant 0 : i32
    %c0_i32_0 = arith.constant 0 : i32
    %c0_i32_1 = arith.constant 0 : i32
    return %c0_i32, %c0_i32_0 : i32, i32
  }
  func.func @transform_2(%arg0: i32) -> (i32, i32) {
    %c0_i32 = arith.constant 0 : i32
    %c0_i32_0 = arith.constant 0 : i32
    %c0_i32_1 = arith.constant 0 : i32
    return %c0_i32, %c0_i32_0 : i32, i32
  }
  func.func @transform_3(%arg0: i32) -> (i32, i32) {
    %c0_i32 = arith.constant 0 : i32
    %c0_i32_0 = arith.constant 0 : i32
    return %arg0, %c0_i32 : i32, i32
  }
}

module attributes {stable_mosaic.version = 11 : i64} {
  func.func @_aggregate_kernel(%arg0: i32, %arg1: memref<256x256xf32, #tpu.memory_space<vmem>>, %arg2: memref<256x128xf32, #tpu.memory_space<vmem>>, %arg3: memref<256x128xf32, #tpu.memory_space<vmem>>) attributes {dimension_semantics = [#tpu.dimension_semantics<parallel>], iteration_bounds = array<i64: 1>, scalar_prefetch = 0 : i64, scratch_operands = 0 : i64, tpu.core_type = #tpu.core_type<tc>, window_params = [{transform_indices = @transform_0, window_bounds = array<i64: 256, 256>}, {pipeline_mode = #tpu.pipeline_mode<synchronous>, transform_indices = @transform_1, window_bounds = array<i64: 256, 128>}, {transform_indices = @transform_2, window_bounds = array<i64: 256, 128>}]} {
    %c0 = arith.constant 0 : index
    %c0_0 = arith.constant 0 : index
    %0 = vector.load %arg1[%c0, %c0_0] : memref<256x256xf32, #tpu.memory_space<vmem>>, vector<256x256xf32>
    %c0_1 = arith.constant 0 : index
    %c0_2 = arith.constant 0 : index
    %1 = vector.load %arg2[%c0_1, %c0_2] : memref<256x128xf32, #tpu.memory_space<vmem>>, vector<256x128xf32>
    %cst = arith.constant dense<0.000000e+00> : vector<256x128xf32>
    %2 = tpu.matmul %0, %1, %cst {dimension_numbers = #tpu.dot_dimension_numbers<[1], [0], [0], [1], [0, 0, 1, 1], [], []>} : vector<256x256xf32>, vector<256x128xf32>, vector<256x128xf32> -> vector<256x128xf32>
    %3 = math.tanh %2 : vector<256x128xf32>
    %c0_3 = arith.constant 0 : index
    %c0_4 = arith.constant 0 : index
    %4 = vector.load %arg3[%c0_3, %c0_4] : memref<256x128xf32, #tpu.memory_space<vmem>>, vector<256x128xf32>
    tpu.vector_store %arg3[%c0_3, %c0_4], %3 {strides = array<i32>} : memref<256x128xf32, #tpu.memory_space<vmem>>, vector<256x128xf32>,
    return
  }
  func.func @transform_0(%arg0: i32) -> (i32, i32) {
    %c0_i32 = arith.constant 0 : i32
    %c0_i32_0 = arith.constant 0 : i32
    return %arg0, %c0_i32 : i32, i32
  }
  func.func @transform_1(%arg0: i32) -> (i32, i32) {
    %c0_i32 = arith.constant 0 : i32
    %c0_i32_0 = arith.constant 0 : i32
    %c0_i32_1 = arith.constant 0 : i32
    return %c0_i32, %c0_i32_0 : i32, i32
  }
  func.func @transform_2(%arg0: i32) -> (i32, i32) {
    %c0_i32 = arith.constant 0 : i32
    %c0_i32_0 = arith.constant 0 : i32
    return %arg0, %c0_i32 : i32, i32
  }
}

module attributes {stable_mosaic.version = 11 : i64} {
  func.func @_linear_kernel(%arg0: i32, %arg1: memref<8x512xf32, #tpu.memory_space<vmem>>, %arg2: memref<512x128xf32, #tpu.memory_space<vmem>>, %arg3: memref<1x128xf32, #tpu.memory_space<vmem>>, %arg4: memref<8x128xf32, #tpu.memory_space<vmem>>) attributes {dimension_semantics = [#tpu.dimension_semantics<parallel>], iteration_bounds = array<i64: 1>, scalar_prefetch = 0 : i64, scratch_operands = 0 : i64, tpu.core_type = #tpu.core_type<tc>, window_params = [{transform_indices = @transform_0, window_bounds = array<i64: 8, 512>}, {pipeline_mode = #tpu.pipeline_mode<synchronous>, transform_indices = @transform_1, window_bounds = array<i64: 512, 128>}, {pipeline_mode = #tpu.pipeline_mode<synchronous>, transform_indices = @transform_2, window_bounds = array<i64: 1, 128>}, {transform_indices = @transform_3, window_bounds = array<i64: 8, 128>}]} {
    %c0 = arith.constant 0 : index
    %c0_0 = arith.constant 0 : index
    %0 = vector.load %arg1[%c0, %c0_0] : memref<8x512xf32, #tpu.memory_space<vmem>>, vector<8x512xf32>
    %c0_1 = arith.constant 0 : index
    %c0_2 = arith.constant 0 : index
    %1 = vector.load %arg2[%c0_1, %c0_2] : memref<512x128xf32, #tpu.memory_space<vmem>>, vector<512x128xf32>
    %cst = arith.constant dense<0.000000e+00> : vector<8x128xf32>
    %2 = tpu.matmul %0, %1, %cst {dimension_numbers = #tpu.dot_dimension_numbers<[1], [0], [0], [1], [0, 0, 1, 1], [], []>} : vector<8x512xf32>, vector<512x128xf32>, vector<8x128xf32> -> vector<8x128xf32>
    %c0_3 = arith.constant 0 : index
    %c0_4 = arith.constant 0 : index
    %3 = vector.load %arg3[%c0_3, %c0_4] : memref<1x128xf32, #tpu.memory_space<vmem>>, vector<1x128xf32>
    %4 = vector.broadcast %3 : vector<1x128xf32> to vector<8x128xf32>
    %5 = arith.addf %2, %4 : vector<8x128xf32>
    %c0_5 = arith.constant 0 : index
    %c0_6 = arith.constant 0 : index
    %6 = vector.load %arg4[%c0_5, %c0_6] : memref<8x128xf32, #tpu.memory_space<vmem>>, vector<8x128xf32>
    tpu.vector_store %arg4[%c0_5, %c0_6], %5 {strides = array<i32>} : memref<8x128xf32, #tpu.memory_space<vmem>>, vector<8x128xf32>,
    return
  }
  func.func @transform_0(%arg0: i32) -> (i32, i32) {
    %c0_i32 = arith.constant 0 : i32
    %c0_i32_0 = arith.constant 0 : i32
    return %arg0, %c0_i32 : i32, i32
  }
  func.func @transform_1(%arg0: i32) -> (i32, i32) {
    %c0_i32 = arith.constant 0 : i32
    %c0_i32_0 = arith.constant 0 : i32
    %c0_i32_1 = arith.constant 0 : i32
    return %c0_i32, %c0_i32_0 : i32, i32
  }
  func.func @transform_2(%arg0: i32) -> (i32, i32) {
    %c0_i32 = arith.constant 0 : i32
    %c0_i32_0 = arith.constant 0 : i32
    %c0_i32_1 = arith.constant 0 : i32
    return %c0_i32, %c0_i32_0 : i32, i32
  }
  func.func @transform_3(%arg0: i32) -> (i32, i32) {
    %c0_i32 = arith.constant 0 : i32
    %c0_i32_0 = arith.constant 0 : i32
    return %arg0, %c0_i32 : i32, i32
  }
}

</mosaic_0001>

<bundles_post_ra>
// kernel: cl_model_forward.6
= control target key start
LH: loop header
LB: loop body
LE: loop exit
PB: predicated region body
PF: predicated region fallthrough
CT: control target
= control target key end

     0   :  { %s561_s1 = inlined_call_operand.vmem [shape: f32[128,128], index: 1, kind: input, shape index: {}]   ;;  %s562_s2 = inlined_call_operand.vmem [shape: f32[1,128], index: 2, kind: input, shape index: {}]   ;;  %s563_s0 = inlined_call_operand.vmem [shape: f32[256,128], index: 0, kind: input, shape index: {}]   ;;  %s564_s3 = inlined_call_operand.vmem [shape: f32[256,128], index: 3, kind: output, shape index: {}]  }
   0x1   :  { %v61_v0 = vld [vmem:[%s561_s1 + $0x78] sm:$0xff]  ;;  %v60_v1 = vld [vmem:[%s561_s1 + $0x70] sm:$0xff]  ;;  %v59_v2 = vld [vmem:[%s561_s1 + $0x68] sm:$0xff] }
   0x2   :  { %216 = vmatpush.msra.mxu2 %v61_v0  ;;  %217 = vmatpush.msra.mxu3 %v61_v0  ;;  %v58_v3 = vld [vmem:[%s561_s1 + $0x60] sm:$0xff]  ;;  %v57_v4 = vld [vmem:[%s561_s1 + $0x58] sm:$0xff]  ;;  %v56_v5 = vld [vmem:[%s561_s1 + $0x50] sm:$0xff] }
   0x3   :  { %66 = vmatpush.msra.mxu0 %v61_v0  ;;  %215 = vmatpush.msra.mxu1 %v61_v0  ;;  %v55_v6 = vld [vmem:[%s561_s1 + $0x48] sm:$0xff]  ;;  %v54_v7 = vld [vmem:[%s561_s1 + $0x40] sm:$0xff]  ;;  %v53_v8 = vld [vmem:[%s561_s1 + $0x38] sm:$0xff] }
   0x4   :  { %219 = vmatpush.msra.mxu2 %v60_v1  ;;  %220 = vmatpush.msra.mxu3 %v60_v1  ;;  %v52_v9 = vld [vmem:[%s561_s1 + $0x30] sm:$0xff]  ;;  %v51_v10 = vld [vmem:[%s561_s1 + $0x28] sm:$0xff]  ;;  %v50_v11 = vld [vmem:[%s561_s1 + $0x20] sm:$0xff] }
   0x5   :  { %67 = vmatpush.msra.mxu0 %v60_v1  ;;  %218 = vmatpush.msra.mxu1 %v60_v1  ;;  %v49_v12 = vld [vmem:[%s561_s1 + $0x18] sm:$0xff]  ;;  %v48_v13 = vld [vmem:[%s561_s1 + $0x10] sm:$0xff]  ;;  %v47_v14 = vld [vmem:[%s561_s1 + $0x8] sm:$0xff] }
   0x6   :  { %222 = vmatpush.msra.mxu2 %v59_v2  ;;  %223 = vmatpush.msra.mxu3 %v59_v2  ;;  %v46_v15 = vld [vmem:[%s561_s1] sm:$0xff]  ;;  %v31_v20 = vld [vmem:[%s563_s0 + $0x88] sm:$0xff]  ;;  %v32_v24 = vld [vmem:[%s563_s0 + $0x90] sm:$0xff] }
   0x7   :  { %68 = vmatpush.msra.mxu0 %v59_v2  ;;  %221 = vmatpush.msra.mxu1 %v59_v2  ;;  %v30_v16 = vld [vmem:[%s563_s0 + $0x80] sm:$0xff]  ;;  %v39_v21 = vld [vmem:[%s563_s0 + $0xc8] sm:$0xff]  ;;  %v40_v25 = vld [vmem:[%s563_s0 + $0xd0] sm:$0xff] }
   0x8   :  { %225 = vmatpush.msra.mxu2 %v58_v3  ;;  %226 = vmatpush.msra.mxu3 %v58_v3  ;;  %v38_v17 = vld [vmem:[%s563_s0 + $0xc0] sm:$0xff]  ;;  %v15_v22 = vld [vmem:[%s563_s0 + $0x8] sm:$0xff]  ;;  %v16_v26 = vld [vmem:[%s563_s0 + $0x10] sm:$0xff] }
   0x9   :  { %69 = vmatpush.msra.mxu0 %v58_v3  ;;  %224 = vmatpush.msra.mxu1 %v58_v3  ;;  %v14_v18 = vld [vmem:[%s563_s0] sm:$0xff]  ;;  %v23_v23 = vld [vmem:[%s563_s0 + $0x48] sm:$0xff]  ;;  %v24_v27 = vld [vmem:[%s563_s0 + $0x50] sm:$0xff] }
   0xa   :  { %228 = vmatpush.msra.mxu2 %v57_v4  ;;  %229 = vmatpush.msra.mxu3 %v57_v4  ;;  %v22_v19 = vld [vmem:[%s563_s0 + $0x40] sm:$0xff]  ;;  %v33_v28 = vld [vmem:[%s563_s0 + $0x98] sm:$0xff]  ;;  %v35_v36 = vld [vmem:[%s563_s0 + $0xa8] sm:$0xff] }
   0xb   :  { %70 = vmatpush.msra.mxu0 %v57_v4  ;;  %227 = vmatpush.msra.mxu1 %v57_v4  ;;  %v41_v29 = vld [vmem:[%s563_s0 + $0xd8] sm:$0xff]  ;;  %v34_v32 = vld [vmem:[%s563_s0 + $0xa0] sm:$0xff]  ;;  %v43_v37 = vld [vmem:[%s563_s0 + $0xe8] sm:$0xff] }
   0xc   :  { %231 = vmatpush.msra.mxu2 %v56_v5  ;;  %232 = vmatpush.msra.mxu3 %v56_v5  ;;  %v17_v30 = vld [vmem:[%s563_s0 + $0x18] sm:$0xff]  ;;  %v42_v33 = vld [vmem:[%s563_s0 + $0xe0] sm:$0xff]  ;;  %v19_v38 = vld [vmem:[%s563_s0 + $0x28] sm:$0xff] }
   0xd   :  { %71 = vmatpush.msra.mxu0 %v56_v5  ;;  %230 = vmatpush.msra.mxu1 %v56_v5  ;;  %v25_v31 = vld [vmem:[%s563_s0 + $0x58] sm:$0xff]  ;;  %v18_v34 = vld [vmem:[%s563_s0 + $0x20] sm:$0xff]  ;;  %v27_v39 = vld [vmem:[%s563_s0 + $0x68] sm:$0xff] }
   0xe   :  { %234 = vmatpush.msra.mxu2 %v55_v6  ;;  %235 = vmatpush.msra.mxu3 %v55_v6  ;;  %v26_v35 = vld [vmem:[%s563_s0 + $0x60] sm:$0xff]  ;;  %v36_v40 = vld [vmem:[%s563_s0 + $0xb0] sm:$0xff]  ;;  %v37_v44 = vld [vmem:[%s563_s0 + $0xb8] sm:$0xff] }
   0xf   :  { %72 = vmatpush.msra.mxu0 %v55_v6  ;;  %233 = vmatpush.msra.mxu1 %v55_v6  ;;  %v44_v41 = vld [vmem:[%s563_s0 + $0xf0] sm:$0xff]  ;;  %v45_v45 = vld [vmem:[%s563_s0 + $0xf8] sm:$0xff]  ;;  %v431_v48 = vld [vmem:[%s562_s2] ss:$0 sm:$0xff] }
  0x10   :  { %237 = vmatpush.msra.mxu2 %v54_v7  ;;  %238 = vmatpush.msra.mxu3 %v54_v7  ;;  %v20_v42 = vld [vmem:[%s563_s0 + $0x30] sm:$0xff]  ;;  %v21_v46 = vld [vmem:[%s563_s0 + $0x38] sm:$0xff] }
  0x11   :  { %73 = vmatpush.msra.mxu0 %v54_v7  ;;  %236 = vmatpush.msra.mxu1 %v54_v7  ;;  %v28_v43 = vld [vmem:[%s563_s0 + $0x70] sm:$0xff]  ;;  %v29_v47 = vld [vmem:[%s563_s0 + $0x78] sm:$0xff] }
  0x12   :  { %240 = vmatpush.msra.mxu2 %v53_v8  ;;  %241 = vmatpush.msra.mxu3 %v53_v8 }
  0x13   :  { %74 = vmatpush.msra.mxu0 %v53_v8  ;;  %239 = vmatpush.msra.mxu1 %v53_v8 }
  0x14   :  { %243 = vmatpush.msra.mxu2 %v52_v9  ;;  %244 = vmatpush.msra.mxu3 %v52_v9 }
  0x15   :  { %75 = vmatpush.msra.mxu0 %v52_v9  ;;  %242 = vmatpush.msra.mxu1 %v52_v9 }
  0x16   :  { %246 = vmatpush.msra.mxu2 %v51_v10  ;;  %247 = vmatpush.msra.mxu3 %v51_v10 }
  0x17   :  { %76 = vmatpush.msra.mxu0 %v51_v10  ;;  %245 = vmatpush.msra.mxu1 %v51_v10 }
  0x18   :  { %249 = vmatpush.msra.mxu2 %v50_v11  ;;  %250 = vmatpush.msra.mxu3 %v50_v11 }
  0x19   :  { %77 = vmatpush.msra.mxu0 %v50_v11  ;;  %248 = vmatpush.msra.mxu1 %v50_v11 }
  0x1a   :  { %252 = vmatpush.msra.mxu2 %v49_v12  ;;  %253 = vmatpush.msra.mxu3 %v49_v12 }
  0x1b   :  { %78 = vmatpush.msra.mxu0 %v49_v12  ;;  %251 = vmatpush.msra.mxu1 %v49_v12 }
  0x1c   :  { %255 = vmatpush.msra.mxu2 %v48_v13  ;;  %256 = vmatpush.msra.mxu3 %v48_v13 }
  0x1d   :  { %79 = vmatpush.msra.mxu0 %v48_v13  ;;  %254 = vmatpush.msra.mxu1 %v48_v13 }
  0x1e   :  { %258 = vmatpush.msra.mxu2 %v47_v14  ;;  %259 = vmatpush.msra.mxu3 %v47_v14 }
  0x1f   :  { %80 = vmatpush.msra.mxu0 %v47_v14  ;;  %257 = vmatpush.msra.mxu1 %v47_v14 }
  0x20   :  { %261 = vmatpush.msra.mxu2 %v46_v15  ;;  %262 = vmatpush.msra.mxu3 %v46_v15 }
  0x21   :  { %130 = vmatmul.f32.vlgmr.msra.gmra.mxu2 %v30_v16  ;;  %154 = vmatmul.f32.vlgmr.msra.gmra.mxu3 %v38_v17 }
  0x22   :  { %81 = vmatpush.msra.mxu0 %v46_v15  ;;  %260 = vmatpush.msra.mxu1 %v46_v15 }
  0x23   :  { %82 = vmatmul.f32.vlgmr.msra.gmra.mxu0 %v14_v18  ;;  %106 = vmatmul.f32.vlgmr.msra.gmra.mxu1 %v22_v19 }
  0x29   :  { %133 = vmatmul.f32.gmra.mxu2 %v31_v20  ;;  %157 = vmatmul.f32.gmra.mxu3 %v39_v21 }
  0x2b   :  { %85 = vmatmul.f32.gmra.mxu0 %v15_v22  ;;  %109 = vmatmul.f32.gmra.mxu1 %v23_v23 }
  0x31   :  { %136 = vmatmul.f32.gmra.mxu2 %v32_v24  ;;  %160 = vmatmul.f32.gmra.mxu3 %v40_v25 }
  0x33   :  { %88 = vmatmul.f32.gmra.mxu0 %v16_v26  ;;  %112 = vmatmul.f32.gmra.mxu1 %v24_v27 }
  0x39   :  { %139 = vmatmul.f32.gmra.mxu2 %v33_v28  ;;  %163 = vmatmul.f32.gmra.mxu3 %v41_v29 }
  0x3b   :  { %91 = vmatmul.f32.gmra.mxu0 %v17_v30  ;;  %115 = vmatmul.f32.gmra.mxu1 %v25_v31 }
  0x41   :  { %142 = vmatmul.f32.gmra.mxu2 %v34_v32  ;;  %166 = vmatmul.f32.gmra.mxu3 %v42_v33 }
  0x43   :  { %94 = vmatmul.f32.gmra.mxu0 %v18_v34  ;;  %118 = vmatmul.f32.gmra.mxu1 %v26_v35 }
  0x49   :  { %145 = vmatmul.f32.gmra.mxu2 %v35_v36  ;;  %169 = vmatmul.f32.gmra.mxu3 %v43_v37 }
  0x4b   :  { %97 = vmatmul.f32.gmra.mxu0 %v19_v38  ;;  %121 = vmatmul.f32.gmra.mxu1 %v27_v39 }
  0x51   :  { %148 = vmatmul.f32.gmra.mxu2 %v36_v40  ;;  %172 = vmatmul.f32.gmra.mxu3 %v44_v41 }
  0x53   :  { %100 = vmatmul.f32.gmra.mxu0 %v20_v42  ;;  %124 = vmatmul.f32.gmra.mxu1 %v28_v43 }
  0x59   :  { %151 = vmatmul.f32.gmra.mxu2 %v37_v44  ;;  %175 = vmatmul.f32.gmra.mxu3 %v45_v45 }
  0x5b   :  { %103 = vmatmul.f32.gmra.mxu0 %v21_v46  ;;  %127 = vmatmul.f32.gmra.mxu1 %v29_v47 }
  0xa0   :  { %v83_v49 = vpop.f32.mrf.mxu0  ;;  %v107_v50 = vpop.f32.mrf.mxu1 }
  0xa1   :  { %v84_v51 = vadd.f32 %v431_v48, %v83_v49  ;;  %v108_v52 = vadd.f32 %v431_v48, %v107_v50 }
  0xa3   :  { %179 = vst [vmem:[%s564_s3] sm:$0xff] %v84_v51 }
  0xa4   :  { %187 = vst [vmem:[%s564_s3 + $0x40] sm:$0xff] %v108_v52  ;;  %v131_v53 = vpop.f32.mrf.mxu2  ;;  %v155_v54 = vpop.f32.mrf.mxu3 }
  0xa5   :  { %v132_v55 = vadd.f32 %v431_v48, %v131_v53  ;;  %v156_v56 = vadd.f32 %v431_v48, %v155_v54 }
  0xa7   :  { %195 = vst [vmem:[%s564_s3 + $0x80] sm:$0xff] %v132_v55 }
  0xa8   :  { %203 = vst [vmem:[%s564_s3 + $0xc0] sm:$0xff] %v156_v56  ;;  %v86_v57 = vpop.f32.mrf.mxu0  ;;  %v110_v58 = vpop.f32.mrf.mxu1 }
  0xa9   :  { %v87_v59 = vadd.f32 %v431_v48, %v86_v57  ;;  %v111_v60 = vadd.f32 %v431_v48, %v110_v58 }
  0xab   :  { %180 = vst [vmem:[%s564_s3 + $0x8] sm:$0xff] %v87_v59 }
  0xac   :  { %188 = vst [vmem:[%s564_s3 + $0x48] sm:$0xff] %v111_v60  ;;  %v134_v61 = vpop.f32.mrf.mxu2  ;;  %v158_v62 = vpop.f32.mrf.mxu3 }
  0xad   :  { %v135_v63 = vadd.f32 %v431_v48, %v134_v61  ;;  %v159_v0 = vadd.f32 %v431_v48, %v158_v62 }
  0xaf   :  { %196 = vst [vmem:[%s564_s3 + $0x88] sm:$0xff] %v135_v63 }
  0xb0   :  { %204 = vst [vmem:[%s564_s3 + $0xc8] sm:$0xff] %v159_v0  ;;  %v89_v1 = vpop.f32.mrf.mxu0  ;;  %v113_v2 = vpop.f32.mrf.mxu1 }
  0xb1   :  { %v90_v3 = vadd.f32 %v431_v48, %v89_v1  ;;  %v114_v4 = vadd.f32 %v431_v48, %v113_v2 }
  0xb3   :  { %181 = vst [vmem:[%s564_s3 + $0x10] sm:$0xff] %v90_v3 }
  0xb4   :  { %189 = vst [vmem:[%s564_s3 + $0x50] sm:$0xff] %v114_v4  ;;  %v137_v5 = vpop.f32.mrf.mxu2  ;;  %v161_v6 = vpop.f32.mrf.mxu3 }
  0xb5   :  { %v138_v7 = vadd.f32 %v431_v48, %v137_v5  ;;  %v162_v8 = vadd.f32 %v431_v48, %v161_v6 }
  0xb7   :  { %197 = vst [vmem:[%s564_s3 + $0x90] sm:$0xff] %v138_v7 }
  0xb8   :  { %205 = vst [vmem:[%s564_s3 + $0xd0] sm:$0xff] %v162_v8  ;;  %v92_v9 = vpop.f32.mrf.mxu0  ;;  %v116_v10 = vpop.f32.mrf.mxu1 }
  0xb9   :  { %v93_v11 = vadd.f32 %v431_v48, %v92_v9  ;;  %v117_v12 = vadd.f32 %v431_v48, %v116_v10 }
  0xbb   :  { %182 = vst [vmem:[%s564_s3 + $0x18] sm:$0xff] %v93_v11 }
  0xbc   :  { %190 = vst [vmem:[%s564_s3 + $0x58] sm:$0xff] %v117_v12  ;;  %v140_v13 = vpop.f32.mrf.mxu2  ;;  %v164_v14 = vpop.f32.mrf.mxu3 }
  0xbd   :  { %v141_v15 = vadd.f32 %v431_v48, %v140_v13  ;;  %v165_v16 = vadd.f32 %v431_v48, %v164_v14 }
  0xbf   :  { %198 = vst [vmem:[%s564_s3 + $0x98] sm:$0xff] %v141_v15 }
  0xc0   :  { %206 = vst [vmem:[%s564_s3 + $0xd8] sm:$0xff] %v165_v16  ;;  %v95_v17 = vpop.f32.mrf.mxu0  ;;  %v119_v18 = vpop.f32.mrf.mxu1 }
  0xc1   :  { %v96_v19 = vadd.f32 %v431_v48, %v95_v17  ;;  %v120_v20 = vadd.f32 %v431_v48, %v119_v18 }
  0xc3   :  { %183 = vst [vmem:[%s564_s3 + $0x20] sm:$0xff] %v96_v19 }
  0xc4   :  { %191 = vst [vmem:[%s564_s3 + $0x60] sm:$0xff] %v120_v20  ;;  %v143_v21 = vpop.f32.mrf.mxu2  ;;  %v167_v22 = vpop.f32.mrf.mxu3 }
  0xc5   :  { %v144_v23 = vadd.f32 %v431_v48, %v143_v21  ;;  %v168_v24 = vadd.f32 %v431_v48, %v167_v22 }
  0xc7   :  { %199 = vst [vmem:[%s564_s3 + $0xa0] sm:$0xff] %v144_v23 }
  0xc8   :  { %207 = vst [vmem:[%s564_s3 + $0xe0] sm:$0xff] %v168_v24  ;;  %v98_v25 = vpop.f32.mrf.mxu0  ;;  %v122_v26 = vpop.f32.mrf.mxu1 }
  0xc9   :  { %v99_v27 = vadd.f32 %v431_v48, %v98_v25  ;;  %v123_v28 = vadd.f32 %v431_v48, %v122_v26 }
  0xcb   :  { %184 = vst [vmem:[%s564_s3 + $0x28] sm:$0xff] %v99_v27 }
  0xcc   :  { %192 = vst [vmem:[%s564_s3 + $0x68] sm:$0xff] %v123_v28  ;;  %v146_v29 = vpop.f32.mrf.mxu2  ;;  %v170_v30 = vpop.f32.mrf.mxu3 }
  0xcd   :  { %v147_v31 = vadd.f32 %v431_v48, %v146_v29  ;;  %v171_v32 = vadd.f32 %v431_v48, %v170_v30 }
  0xcf   :  { %200 = vst [vmem:[%s564_s3 + $0xa8] sm:$0xff] %v147_v31 }
  0xd0   :  { %208 = vst [vmem:[%s564_s3 + $0xe8] sm:$0xff] %v171_v32  ;;  %v101_v33 = vpop.f32.mrf.mxu0  ;;  %v125_v34 = vpop.f32.mrf.mxu1 }
  0xd1   :  { %v102_v35 = vadd.f32 %v431_v48, %v101_v33  ;;  %v126_v36 = vadd.f32 %v431_v48, %v125_v34 }
  0xd3   :  { %185 = vst [vmem:[%s564_s3 + $0x30] sm:$0xff] %v102_v35 }
  0xd4   :  { %193 = vst [vmem:[%s564_s3 + $0x70] sm:$0xff] %v126_v36  ;;  %v149_v37 = vpop.f32.mrf.mxu2  ;;  %v173_v38 = vpop.f32.mrf.mxu3 }
  0xd5   :  { %v150_v39 = vadd.f32 %v431_v48, %v149_v37  ;;  %v174_v40 = vadd.f32 %v431_v48, %v173_v38 }
  0xd7   :  { %201 = vst [vmem:[%s564_s3 + $0xb0] sm:$0xff] %v150_v39 }
  0xd8   :  { %209 = vst [vmem:[%s564_s3 + $0xf0] sm:$0xff] %v174_v40  ;;  %v104_v41 = vpop.f32.mrf.mxu0  ;;  %v128_v42 = vpop.f32.mrf.mxu1 }
  0xd9   :  { %v105_v43 = vadd.f32 %v431_v48, %v104_v41  ;;  %v129_v44 = vadd.f32 %v431_v48, %v128_v42 }
  0xdb   :  { %186 = vst [vmem:[%s564_s3 + $0x38] sm:$0xff] %v105_v43 }
  0xdc   :  { %194 = vst [vmem:[%s564_s3 + $0x78] sm:$0xff] %v129_v44  ;;  %v152_v45 = vpop.f32.mrf.mxu2  ;;  %v176_v46 = vpop.f32.mrf.mxu3 }
  0xdd   :  { %v153_v47 = vadd.f32 %v431_v48, %v152_v45  ;;  %v177_v49 = vadd.f32 %v431_v48, %v176_v46 }
  0xdf   :  { %202 = vst [vmem:[%s564_s3 + $0xb8] sm:$0xff] %v153_v47 }
  0xe0   :  { %210 = vst [vmem:[%s564_s3 + $0xf8] sm:$0xff] %v177_v49 }

// kernel: cl_model_forward.7
= control target key start
LH: loop header
LB: loop body
LE: loop exit
PB: predicated region body
PF: predicated region fallthrough
CT: control target
= control target key end

     0   :  { %s896_s1 = inlined_call_operand.vmem [shape: f32[256,128], index: 1, kind: input, shape index: {}]   ;;  %s897_s0 = inlined_call_operand.vmem [shape: f32[256,256], index: 0, kind: input, shape index: {}]   ;;  %s898_s2 = inlined_call_operand.vmem [shape: f32[256,128], index: 2, kind: output, shape index: {}]  }
   0x1   :  { %v90_v0 = vld [vmem:[%s896_s1 + $0x78] sm:$0xff]  ;;  %v89_v2 = vld [vmem:[%s896_s1 + $0x70] sm:$0xff]  ;;  %v88_v4 = vld [vmem:[%s896_s1 + $0x68] sm:$0xff] }
   0x2   :  { %v106_v1 = vld [vmem:[%s896_s1 + $0xf8] sm:$0xff]  ;;  %401 = vmatpush.msra.mxu2 %v90_v0  ;;  %v105_v3 = vld [vmem:[%s896_s1 + $0xf0] sm:$0xff]  ;;  %v104_v5 = vld [vmem:[%s896_s1 + $0xe8] sm:$0xff]  ;;  %107 = vmatpush.msra.mxu0 %v90_v0 }
   0x3   :  { %417 = vmatpush.msra.mxu3 %v106_v1  ;;  %220 = vmatpush.msra.mxu1 %v106_v1  ;;  %v87_v6 = vld [vmem:[%s896_s1 + $0x60] sm:$0xff]  ;;  %v86_v8 = vld [vmem:[%s896_s1 + $0x58] sm:$0xff]  ;;  %v85_v10 = vld [vmem:[%s896_s1 + $0x50] sm:$0xff] }
   0x4   :  { %402 = vmatpush.msra.mxu2 %v89_v2  ;;  %v103_v7 = vld [vmem:[%s896_s1 + $0xe0] sm:$0xff]  ;;  %108 = vmatpush.msra.mxu0 %v89_v2  ;;  %v102_v9 = vld [vmem:[%s896_s1 + $0xd8] sm:$0xff]  ;;  %v101_v11 = vld [vmem:[%s896_s1 + $0xd0] sm:$0xff] }
   0x5   :  { %418 = vmatpush.msra.mxu3 %v105_v3  ;;  %221 = vmatpush.msra.mxu1 %v105_v3  ;;  %v84_v12 = vld [vmem:[%s896_s1 + $0x48] sm:$0xff]  ;;  %v83_v14 = vld [vmem:[%s896_s1 + $0x40] sm:$0xff]  ;;  %v82_v16 = vld [vmem:[%s896_s1 + $0x38] sm:$0xff] }
   0x6   :  { %403 = vmatpush.msra.mxu2 %v88_v4  ;;  %109 = vmatpush.msra.mxu0 %v88_v4  ;;  %v100_v13 = vld [vmem:[%s896_s1 + $0xc8] sm:$0xff]  ;;  %v99_v15 = vld [vmem:[%s896_s1 + $0xc0] sm:$0xff]  ;;  %v98_v17 = vld [vmem:[%s896_s1 + $0xb8] sm:$0xff] }
   0x7   :  { %419 = vmatpush.msra.mxu3 %v104_v5  ;;  %222 = vmatpush.msra.mxu1 %v104_v5  ;;  %v81_v18 = vld [vmem:[%s896_s1 + $0x30] sm:$0xff]  ;;  %v80_v20 = vld [vmem:[%s896_s1 + $0x28] sm:$0xff]  ;;  %v79_v22 = vld [vmem:[%s896_s1 + $0x20] sm:$0xff] }
   0x8   :  { %404 = vmatpush.msra.mxu2 %v87_v6  ;;  %110 = vmatpush.msra.mxu0 %v87_v6  ;;  %v97_v19 = vld [vmem:[%s896_s1 + $0xb0] sm:$0xff]  ;;  %v96_v21 = vld [vmem:[%s896_s1 + $0xa8] sm:$0xff]  ;;  %v95_v23 = vld [vmem:[%s896_s1 + $0xa0] sm:$0xff] }
   0x9   :  { %420 = vmatpush.msra.mxu3 %v103_v7  ;;  %223 = vmatpush.msra.mxu1 %v103_v7  ;;  %v78_v24 = vld [vmem:[%s896_s1 + $0x18] sm:$0xff]  ;;  %v77_v26 = vld [vmem:[%s896_s1 + $0x10] sm:$0xff]  ;;  %v76_v28 = vld [vmem:[%s896_s1 + $0x8] sm:$0xff] }
   0xa   :  { %405 = vmatpush.msra.mxu2 %v86_v8  ;;  %111 = vmatpush.msra.mxu0 %v86_v8  ;;  %v94_v25 = vld [vmem:[%s896_s1 + $0x98] sm:$0xff]  ;;  %v93_v27 = vld [vmem:[%s896_s1 + $0x90] sm:$0xff]  ;;  %v92_v29 = vld [vmem:[%s896_s1 + $0x88] sm:$0xff] }
   0xb   :  { %421 = vmatpush.msra.mxu3 %v102_v9  ;;  %224 = vmatpush.msra.mxu1 %v102_v9  ;;  %v75_v30 = vld [vmem:[%s896_s1] sm:$0xff]  ;;  %v44_v33 = vld [vmem:[%s897_s0 + $0x108] sm:$0xff]  ;;  %v45_v36 = vld [vmem:[%s897_s0 + $0x110] sm:$0xff] }
   0xc   :  { %406 = vmatpush.msra.mxu2 %v85_v10  ;;  %112 = vmatpush.msra.mxu0 %v85_v10  ;;  %v91_v31 = vld [vmem:[%s896_s1 + $0x80] sm:$0xff]  ;;  %v12_v35 = vld [vmem:[%s897_s0 + $0x8] sm:$0xff]  ;;  %v46_v37 = vld [vmem:[%s897_s0 + $0x118] sm:$0xff] }
   0xd   :  { %422 = vmatpush.msra.mxu3 %v101_v11  ;;  %225 = vmatpush.msra.mxu1 %v101_v11  ;;  %v43_v32 = vld [vmem:[%s897_s0 + $0x100] sm:$0xff]  ;;  %v13_v38 = vld [vmem:[%s897_s0 + $0x10] sm:$0xff]  ;;  %v14_v39 = vld [vmem:[%s897_s0 + $0x18] sm:$0xff] }
   0xe   :  { %407 = vmatpush.msra.mxu2 %v84_v12  ;;  %113 = vmatpush.msra.mxu0 %v84_v12  ;;  %v11_v34 = vld [vmem:[%s897_s0] sm:$0xff]  ;;  %v48_v41 = vld [vmem:[%s897_s0 + $0x128] sm:$0xff]  ;;  %v49_v44 = vld [vmem:[%s897_s0 + $0x130] sm:$0xff] }
   0xf   :  { %423 = vmatpush.msra.mxu3 %v100_v13  ;;  %226 = vmatpush.msra.mxu1 %v100_v13  ;;  %v47_v40 = vld [vmem:[%s897_s0 + $0x120] sm:$0xff]  ;;  %v16_v43 = vld [vmem:[%s897_s0 + $0x28] sm:$0xff]  ;;  %v50_v45 = vld [vmem:[%s897_s0 + $0x138] sm:$0xff] }
  0x10   :  { %408 = vmatpush.msra.mxu2 %v83_v14  ;;  %114 = vmatpush.msra.mxu0 %v83_v14  ;;  %v15_v42 = vld [vmem:[%s897_s0 + $0x20] sm:$0xff]  ;;  %v17_v46 = vld [vmem:[%s897_s0 + $0x30] sm:$0xff]  ;;  %v18_v47 = vld [vmem:[%s897_s0 + $0x38] sm:$0xff] }
  0x11   :  { %424 = vmatpush.msra.mxu3 %v99_v15  ;;  %227 = vmatpush.msra.mxu1 %v99_v15  ;;  %v51_v48 = vld [vmem:[%s897_s0 + $0x140] sm:$0xff]  ;;  %v52_v49 = vld [vmem:[%s897_s0 + $0x148] sm:$0xff]  ;;  %v53_v52 = vld [vmem:[%s897_s0 + $0x150] sm:$0xff] }
  0x12   :  { %409 = vmatpush.msra.mxu2 %v82_v16  ;;  %115 = vmatpush.msra.mxu0 %v82_v16  ;;  %v19_v50 = vld [vmem:[%s897_s0 + $0x40] sm:$0xff]  ;;  %v20_v51 = vld [vmem:[%s897_s0 + $0x48] sm:$0xff]  ;;  %v54_v53 = vld [vmem:[%s897_s0 + $0x158] sm:$0xff] }
  0x13   :  { %425 = vmatpush.msra.mxu3 %v98_v17  ;;  %228 = vmatpush.msra.mxu1 %v98_v17  ;;  %v21_v54 = vld [vmem:[%s897_s0 + $0x50] sm:$0xff]  ;;  %v22_v55 = vld [vmem:[%s897_s0 + $0x58] sm:$0xff]  ;;  %v55_v56 = vld [vmem:[%s897_s0 + $0x160] sm:$0xff] }
  0x14   :  { %410 = vmatpush.msra.mxu2 %v81_v18  ;;  %116 = vmatpush.msra.mxu0 %v81_v18  ;;  %v56_v57 = vld [vmem:[%s897_s0 + $0x168] sm:$0xff]  ;;  %v23_v58 = vld [vmem:[%s897_s0 + $0x60] sm:$0xff]  ;;  %v57_v60 = vld [vmem:[%s897_s0 + $0x170] sm:$0xff] }
  0x15   :  { %426 = vmatpush.msra.mxu3 %v97_v19  ;;  %229 = vmatpush.msra.mxu1 %v97_v19  ;;  %v24_v59 = vld [vmem:[%s897_s0 + $0x68] sm:$0xff]  ;;  %v58_v61 = vld [vmem:[%s897_s0 + $0x178] sm:$0xff]  ;;  %v25_v62 = vld [vmem:[%s897_s0 + $0x70] sm:$0xff] }
  0x16   :  { %411 = vmatpush.msra.mxu2 %v80_v20  ;;  %117 = vmatpush.msra.mxu0 %v80_v20  ;;  %v26_v63 = vld [vmem:[%s897_s0 + $0x78] sm:$0xff]  ;;  %v59_v0 = vld [vmem:[%s897_s0 + $0x180] sm:$0xff]  ;;  %v60_v1 = vld [vmem:[%s897_s0 + $0x188] sm:$0xff] }
  0x17   :  { %427 = vmatpush.msra.mxu3 %v96_v21  ;;  %230 = vmatpush.msra.mxu1 %v96_v21  ;;  %v27_v2 = vld [vmem:[%s897_s0 + $0x80] sm:$0xff]  ;;  %v28_v3 = vld [vmem:[%s897_s0 + $0x88] sm:$0xff]  ;;  %v61_v4 = vld [vmem:[%s897_s0 + $0x190] sm:$0xff] }
  0x18   :  { %412 = vmatpush.msra.mxu2 %v79_v22  ;;  %118 = vmatpush.msra.mxu0 %v79_v22  ;;  %v62_v5 = vld [vmem:[%s897_s0 + $0x198] sm:$0xff]  ;;  %v29_v6 = vld [vmem:[%s897_s0 + $0x90] sm:$0xff]  ;;  %v63_v8 = vld [vmem:[%s897_s0 + $0x1a0] sm:$0xff] }
  0x19   :  { %428 = vmatpush.msra.mxu3 %v95_v23  ;;  %231 = vmatpush.msra.mxu1 %v95_v23  ;;  %v30_v7 = vld [vmem:[%s897_s0 + $0x98] sm:$0xff]  ;;  %v64_v9 = vld [vmem:[%s897_s0 + $0x1a8] sm:$0xff]  ;;  %v31_v10 = vld [vmem:[%s897_s0 + $0xa0] sm:$0xff] }
  0x1a   :  { %413 = vmatpush.msra.mxu2 %v78_v24  ;;  %119 = vmatpush.msra.mxu0 %v78_v24  ;;  %v32_v11 = vld [vmem:[%s897_s0 + $0xa8] sm:$0xff]  ;;  %v65_v12 = vld [vmem:[%s897_s0 + $0x1b0] sm:$0xff]  ;;  %v66_v13 = vld [vmem:[%s897_s0 + $0x1b8] sm:$0xff] }
  0x1b   :  { %429 = vmatpush.msra.mxu3 %v94_v25  ;;  %232 = vmatpush.msra.mxu1 %v94_v25  ;;  %v33_v14 = vld [vmem:[%s897_s0 + $0xb0] sm:$0xff]  ;;  %v34_v15 = vld [vmem:[%s897_s0 + $0xb8] sm:$0xff]  ;;  %v67_v16 = vld [vmem:[%s897_s0 + $0x1c0] sm:$0xff] }
  0x1c   :  { %414 = vmatpush.msra.mxu2 %v77_v26  ;;  %120 = vmatpush.msra.mxu0 %v77_v26  ;;  %v68_v17 = vld [vmem:[%s897_s0 + $0x1c8] sm:$0xff]  ;;  %v35_v18 = vld [vmem:[%s897_s0 + $0xc0] sm:$0xff]  ;;  %v69_v20 = vld [vmem:[%s897_s0 + $0x1d0] sm:$0xff] }
  0x1d   :  { %430 = vmatpush.msra.mxu3 %v93_v27  ;;  %233 = vmatpush.msra.mxu1 %v93_v27  ;;  %v36_v19 = vld [vmem:[%s897_s0 + $0xc8] sm:$0xff]  ;;  %v70_v21 = vld [vmem:[%s897_s0 + $0x1d8] sm:$0xff]  ;;  %v37_v22 = vld [vmem:[%s897_s0 + $0xd0] sm:$0xff] }
  0x1e   :  { %415 = vmatpush.msra.mxu2 %v76_v28  ;;  %121 = vmatpush.msra.mxu0 %v76_v28  ;;  %v38_v23 = vld [vmem:[%s897_s0 + $0xd8] sm:$0xff]  ;;  %v71_v24 = vld [vmem:[%s897_s0 + $0x1e0] sm:$0xff]  ;;  %v72_v25 = vld [vmem:[%s897_s0 + $0x1e8] sm:$0xff] }
  0x1f   :  { %431 = vmatpush.msra.mxu3 %v92_v29  ;;  %234 = vmatpush.msra.mxu1 %v92_v29  ;;  %v39_v26 = vld [vmem:[%s897_s0 + $0xe0] sm:$0xff]  ;;  %v40_v27 = vld [vmem:[%s897_s0 + $0xe8] sm:$0xff]  ;;  %v73_v28 = vld [vmem:[%s897_s0 + $0x1f0] sm:$0xff] }
  0x20   :  { %416 = vmatpush.msra.mxu2 %v75_v30  ;;  %122 = vmatpush.msra.mxu0 %v75_v30  ;;  %v74_v29 = vld [vmem:[%s897_s0 + $0x1f8] sm:$0xff]  ;;  %v41_v30 = vld [vmem:[%s897_s0 + $0xf0] sm:$0xff] }
  0x21   :  { %432 = vmatpush.msra.mxu3 %v91_v31  ;;  %171 = vmatmul.f32.vlgmr.msra.gmra.mxu2 %v43_v32 }
  0x22   :  { %284 = vmatmul.f32.vlgmr.msra.gmra.mxu3 %v44_v33  ;;  %235 = vmatpush.msra.mxu1 %v91_v31  ;;  %v42_v31 = vld [vmem:[%s897_s0 + $0xf8] sm:$0xff] }
  0x23   :  { %123 = vmatmul.f32.vlgmr.msra.gmra.mxu0 %v11_v34  ;;  %236 = vmatmul.f32.vlgmr.msra.gmra.mxu1 %v12_v35 }
  0x29   :  { %174 = vmatmul.f32.gmra.mxu2 %v45_v36 }
  0x2a   :  { %287 = vmatmul.f32.gmra.mxu3 %v46_v37 }
  0x2b   :  { %126 = vmatmul.f32.gmra.mxu0 %v13_v38  ;;  %239 = vmatmul.f32.gmra.mxu1 %v14_v39 }
  0x31   :  { %177 = vmatmul.f32.gmra.mxu2 %v47_v40 }
  0x32   :  { %290 = vmatmul.f32.gmra.mxu3 %v48_v41 }
  0x33   :  { %129 = vmatmul.f32.gmra.mxu0 %v15_v42  ;;  %242 = vmatmul.f32.gmra.mxu1 %v16_v43 }
  0x39   :  { %180 = vmatmul.f32.gmra.mxu2 %v49_v44 }
  0x3a   :  { %293 = vmatmul.f32.gmra.mxu3 %v50_v45 }
  0x3b   :  { %132 = vmatmul.f32.gmra.mxu0 %v17_v46  ;;  %245 = vmatmul.f32.gmra.mxu1 %v18_v47 }
  0x41   :  { %183 = vmatmul.f32.gmra.mxu2 %v51_v48 }
  0x42   :  { %296 = vmatmul.f32.gmra.mxu3 %v52_v49 }
  0x43   :  { %135 = vmatmul.f32.gmra.mxu0 %v19_v50  ;;  %248 = vmatmul.f32.gmra.mxu1 %v20_v51 }
  0x49   :  { %186 = vmatmul.f32.gmra.mxu2 %v53_v52 }
  0x4a   :  { %299 = vmatmul.f32.gmra.mxu3 %v54_v53 }
  0x4b   :  { %138 = vmatmul.f32.gmra.mxu0 %v21_v54  ;;  %251 = vmatmul.f32.gmra.mxu1 %v22_v55 }
  0x51   :  { %189 = vmatmul.f32.gmra.mxu2 %v55_v56 }
  0x52   :  { %302 = vmatmul.f32.gmra.mxu3 %v56_v57 }
  0x53   :  { %141 = vmatmul.f32.gmra.mxu0 %v23_v58  ;;  %254 = vmatmul.f32.gmra.mxu1 %v24_v59 }
  0x59   :  { %192 = vmatmul.f32.gmra.mxu2 %v57_v60 }
  0x5a   :  { %305 = vmatmul.f32.gmra.mxu3 %v58_v61 }
  0x5b   :  { %144 = vmatmul.f32.gmra.mxu0 %v25_v62  ;;  %257 = vmatmul.f32.gmra.mxu1 %v26_v63 }
  0x61   :  { %195 = vmatmul.f32.gmra.mxu2 %v59_v0 }
  0x62   :  { %308 = vmatmul.f32.gmra.mxu3 %v60_v1 }
  0x63   :  { %147 = vmatmul.f32.gmra.mxu0 %v27_v2  ;;  %260 = vmatmul.f32.gmra.mxu1 %v28_v3 }
  0x69   :  { %198 = vmatmul.f32.gmra.mxu2 %v61_v4 }
  0x6a   :  { %311 = vmatmul.f32.gmra.mxu3 %v62_v5 }
  0x6b   :  { %150 = vmatmul.f32.gmra.mxu0 %v29_v6  ;;  %263 = vmatmul.f32.gmra.mxu1 %v30_v7 }
  0x71   :  { %201 = vmatmul.f32.gmra.mxu2 %v63_v8 }
  0x72   :  { %314 = vmatmul.f32.gmra.mxu3 %v64_v9 }
  0x73   :  { %153 = vmatmul.f32.gmra.mxu0 %v31_v10  ;;  %266 = vmatmul.f32.gmra.mxu1 %v32_v11 }
  0x79   :  { %204 = vmatmul.f32.gmra.mxu2 %v65_v12 }
  0x7a   :  { %317 = vmatmul.f32.gmra.mxu3 %v66_v13 }
  0x7b   :  { %156 = vmatmul.f32.gmra.mxu0 %v33_v14  ;;  %269 = vmatmul.f32.gmra.mxu1 %v34_v15 }
  0x81   :  { %207 = vmatmul.f32.gmra.mxu2 %v67_v16 }
  0x82   :  { %320 = vmatmul.f32.gmra.mxu3 %v68_v17 }
  0x83   :  { %159 = vmatmul.f32.gmra.mxu0 %v35_v18  ;;  %272 = vmatmul.f32.gmra.mxu1 %v36_v19 }
  0x89   :  { %210 = vmatmul.f32.gmra.mxu2 %v69_v20 }
  0x8a   :  { %323 = vmatmul.f32.gmra.mxu3 %v70_v21 }
  0x8b   :  { %162 = vmatmul.f32.gmra.mxu0 %v37_v22  ;;  %275 = vmatmul.f32.gmra.mxu1 %v38_v23 }
  0x91   :  { %213 = vmatmul.f32.gmra.mxu2 %v71_v24 }
  0x92   :  { %326 = vmatmul.f32.gmra.mxu3 %v72_v25 }
  0x93   :  { %165 = vmatmul.f32.gmra.mxu0 %v39_v26  ;;  %278 = vmatmul.f32.gmra.mxu1 %v40_v27 }
  0x99   :  { %216 = vmatmul.f32.gmra.mxu2 %v73_v28 }
  0x9a   :  { %329 = vmatmul.f32.gmra.mxu3 %v74_v29 }
  0x9b   :  { %168 = vmatmul.f32.gmra.mxu0 %v41_v30  ;;  %281 = vmatmul.f32.gmra.mxu1 %v42_v31 }
  0xa0   :  { %v124_v32 = vpop.f32.mrf.mxu0  ;;  %v237_v33 = vpop.f32.mrf.mxu1 }
  0xa1   :  { %v238_v34 = vadd.f32 %v237_v33, %v124_v32 }
  0xa3   :  { %433 = vtanh.f32 %v238_v34 }
  0xa4   :  { %v172_v35 = vpop.f32.mrf.mxu2 }
  0xa5   :  { %v285_v36 = vpop.f32.mrf.mxu3 }
  0xa6   :  { %v286_v37 = vadd.f32 %v285_v36, %v172_v35 }
  0xa8   :  { %435 = vtanh.f32 %v286_v37  ;;  %v127_v38 = vpop.f32.mrf.mxu0  ;;  %v240_v39 = vpop.f32.mrf.mxu1 }
  0xa9   :  { %v434_v40 = vpop.eup %433  ;;  %v241_v41 = vadd.f32 %v240_v39, %v127_v38 }
  0xaa   :  { %365 = vst [vmem:[%s898_s2] sm:$0xff] %v434_v40 }
  0xab   :  { %437 = vtanh.f32 %v241_v41 }
  0xac   :  { %v175_v42 = vpop.f32.mrf.mxu2 }
  0xad   :  { %v288_v43 = vpop.f32.mrf.mxu3 }
  0xae   :  { %v436_v44 = vpop.eup %435  ;;  %v289_v45 = vadd.f32 %v288_v43, %v175_v42 }
  0xaf   :  { %381 = vst [vmem:[%s898_s2 + $0x80] sm:$0xff] %v436_v44 }
  0xb0   :  { %439 = vtanh.f32 %v289_v45  ;;  %v130_v46 = vpop.f32.mrf.mxu0  ;;  %v243_v47 = vpop.f32.mrf.mxu1 }
  0xb1   :  { %v438_v48 = vpop.eup %437  ;;  %v244_v49 = vadd.f32 %v243_v47, %v130_v46 }
  0xb2   :  { %366 = vst [vmem:[%s898_s2 + $0x8] sm:$0xff] %v438_v48 }
  0xb3   :  { %441 = vtanh.f32 %v244_v49 }
  0xb4   :  { %v178_v50 = vpop.f32.mrf.mxu2 }
  0xb5   :  { %v291_v51 = vpop.f32.mrf.mxu3 }
  0xb6   :  { %v440_v52 = vpop.eup %439  ;;  %v292_v53 = vadd.f32 %v291_v51, %v178_v50 }
  0xb7   :  { %382 = vst [vmem:[%s898_s2 + $0x88] sm:$0xff] %v440_v52 }
  0xb8   :  { %443 = vtanh.f32 %v292_v53  ;;  %v133_v54 = vpop.f32.mrf.mxu0  ;;  %v246_v55 = vpop.f32.mrf.mxu1 }
  0xb9   :  { %v442_v56 = vpop.eup %441  ;;  %v247_v57 = vadd.f32 %v246_v55, %v133_v54 }
  0xba   :  { %367 = vst [vmem:[%s898_s2 + $0x10] sm:$0xff] %v442_v56 }
  0xbb   :  { %445 = vtanh.f32 %v247_v57 }
  0xbc   :  { %v181_v58 = vpop.f32.mrf.mxu2 }
  0xbd   :  { %v294_v59 = vpop.f32.mrf.mxu3 }
  0xbe   :  { %v444_v60 = vpop.eup %443  ;;  %v295_v61 = vadd.f32 %v294_v59, %v181_v58 }
  0xbf   :  { %383 = vst [vmem:[%s898_s2 + $0x90] sm:$0xff] %v444_v60 }
  0xc0   :  { %447 = vtanh.f32 %v295_v61  ;;  %v136_v62 = vpop.f32.mrf.mxu0  ;;  %v249_v63 = vpop.f32.mrf.mxu1 }
  0xc1   :  { %v446_v0 = vpop.eup %445  ;;  %v250_v1 = vadd.f32 %v249_v63, %v136_v62 }
  0xc2   :  { %368 = vst [vmem:[%s898_s2 + $0x18] sm:$0xff] %v446_v0 }
  0xc3   :  { %449 = vtanh.f32 %v250_v1 }
  0xc4   :  { %v184_v2 = vpop.f32.mrf.mxu2 }
  0xc5   :  { %v297_v3 = vpop.f32.mrf.mxu3 }
  0xc6   :  { %v448_v4 = vpop.eup %447  ;;  %v298_v5 = vadd.f32 %v297_v3, %v184_v2 }
  0xc7   :  { %384 = vst [vmem:[%s898_s2 + $0x98] sm:$0xff] %v448_v4 }
  0xc8   :  { %451 = vtanh.f32 %v298_v5  ;;  %v139_v6 = vpop.f32.mrf.mxu0  ;;  %v252_v7 = vpop.f32.mrf.mxu1 }
  0xc9   :  { %v450_v8 = vpop.eup %449  ;;  %v253_v9 = vadd.f32 %v252_v7, %v139_v6 }
  0xca   :  { %369 = vst [vmem:[%s898_s2 + $0x20] sm:$0xff] %v450_v8 }
  0xcb   :  { %453 = vtanh.f32 %v253_v9 }
  0xcc   :  { %v187_v10 = vpop.f32.mrf.mxu2 }
  0xcd   :  { %v300_v11 = vpop.f32.mrf.mxu3 }
  0xce   :  { %v452_v12 = vpop.eup %451  ;;  %v301_v13 = vadd.f32 %v300_v11, %v187_v10 }
  0xcf   :  { %385 = vst [vmem:[%s898_s2 + $0xa0] sm:$0xff] %v452_v12 }
  0xd0   :  { %455 = vtanh.f32 %v301_v13  ;;  %v142_v14 = vpop.f32.mrf.mxu0  ;;  %v255_v15 = vpop.f32.mrf.mxu1 }
  0xd1   :  { %v454_v16 = vpop.eup %453  ;;  %v256_v17 = vadd.f32 %v255_v15, %v142_v14 }
  0xd2   :  { %370 = vst [vmem:[%s898_s2 + $0x28] sm:$0xff] %v454_v16 }
  0xd3   :  { %457 = vtanh.f32 %v256_v17 }
  0xd4   :  { %v190_v18 = vpop.f32.mrf.mxu2 }
  0xd5   :  { %v303_v19 = vpop.f32.mrf.mxu3 }
  0xd6   :  { %v456_v20 = vpop.eup %455  ;;  %v304_v21 = vadd.f32 %v303_v19, %v190_v18 }
  0xd7   :  { %386 = vst [vmem:[%s898_s2 + $0xa8] sm:$0xff] %v456_v20 }
  0xd8   :  { %459 = vtanh.f32 %v304_v21  ;;  %v145_v22 = vpop.f32.mrf.mxu0  ;;  %v258_v23 = vpop.f32.mrf.mxu1 }
  0xd9   :  { %v458_v24 = vpop.eup %457  ;;  %v259_v25 = vadd.f32 %v258_v23, %v145_v22 }
  0xda   :  { %371 = vst [vmem:[%s898_s2 + $0x30] sm:$0xff] %v458_v24 }
  0xdb   :  { %461 = vtanh.f32 %v259_v25 }
  0xdc   :  { %v193_v26 = vpop.f32.mrf.mxu2 }
  0xdd   :  { %v306_v27 = vpop.f32.mrf.mxu3 }
  0xde   :  { %v460_v28 = vpop.eup %459  ;;  %v307_v29 = vadd.f32 %v306_v27, %v193_v26 }
  0xdf   :  { %387 = vst [vmem:[%s898_s2 + $0xb0] sm:$0xff] %v460_v28 }
  0xe0   :  { %463 = vtanh.f32 %v307_v29  ;;  %v148_v30 = vpop.f32.mrf.mxu0  ;;  %v261_v31 = vpop.f32.mrf.mxu1 }
  0xe1   :  { %v462_v32 = vpop.eup %461  ;;  %v262_v33 = vadd.f32 %v261_v31, %v148_v30 }
  0xe2   :  { %372 = vst [vmem:[%s898_s2 + $0x38] sm:$0xff] %v462_v32 }
  0xe3   :  { %465 = vtanh.f32 %v262_v33 }
  0xe4   :  { %v196_v34 = vpop.f32.mrf.mxu2 }
  0xe5   :  { %v309_v35 = vpop.f32.mrf.mxu3 }
  0xe6   :  { %v464_v36 = vpop.eup %463  ;;  %v310_v37 = vadd.f32 %v309_v35, %v196_v34 }
  0xe7   :  { %388 = vst [vmem:[%s898_s2 + $0xb8] sm:$0xff] %v464_v36 }
  0xe8   :  { %467 = vtanh.f32 %v310_v37  ;;  %v151_v38 = vpop.f32.mrf.mxu0  ;;  %v264_v39 = vpop.f32.mrf.mxu1 }
  0xe9   :  { %v466_v40 = vpop.eup %465  ;;  %v265_v41 = vadd.f32 %v264_v39, %v151_v38 }
  0xea   :  { %373 = vst [vmem:[%s898_s2 + $0x40] sm:$0xff] %v466_v40 }
  0xeb   :  { %469 = vtanh.f32 %v265_v41 }
  0xec   :  { %v199_v42 = vpop.f32.mrf.mxu2 }
  0xed   :  { %v312_v43 = vpop.f32.mrf.mxu3 }
  0xee   :  { %v468_v44 = vpop.eup %467  ;;  %v313_v45 = vadd.f32 %v312_v43, %v199_v42 }
  0xef   :  { %389 = vst [vmem:[%s898_s2 + $0xc0] sm:$0xff] %v468_v44 }
  0xf0   :  { %471 = vtanh.f32 %v313_v45  ;;  %v154_v46 = vpop.f32.mrf.mxu0  ;;  %v267_v47 = vpop.f32.mrf.mxu1 }
  0xf1   :  { %v470_v48 = vpop.eup %469  ;;  %v268_v49 = vadd.f32 %v267_v47, %v154_v46 }
  0xf2   :  { %374 = vst [vmem:[%s898_s2 + $0x48] sm:$0xff] %v470_v48 }
  0xf3   :  { %473 = vtanh.f32 %v268_v49 }
  0xf4   :  { %v202_v50 = vpop.f32.mrf.mxu2 }
  0xf5   :  { %v315_v51 = vpop.f32.mrf.mxu3 }
  0xf6   :  { %v472_v52 = vpop.eup %471  ;;  %v316_v53 = vadd.f32 %v315_v51, %v202_v50 }
  0xf7   :  { %390 = vst [vmem:[%s898_s2 + $0xc8] sm:$0xff] %v472_v52 }
  0xf8   :  { %475 = vtanh.f32 %v316_v53  ;;  %v157_v54 = vpop.f32.mrf.mxu0  ;;  %v270_v55 = vpop.f32.mrf.mxu1 }
  0xf9   :  { %v474_v56 = vpop.eup %473  ;;  %v271_v57 = vadd.f32 %v270_v55, %v157_v54 }
  0xfa   :  { %375 = vst [vmem:[%s898_s2 + $0x50] sm:$0xff] %v474_v56 }
  0xfb   :  { %477 = vtanh.f32 %v271_v57 }
  0xfc   :  { %v205_v58 = vpop.f32.mrf.mxu2 }
  0xfd   :  { %v318_v59 = vpop.f32.mrf.mxu3 }
  0xfe   :  { %v476_v60 = vpop.eup %475  ;;  %v319_v61 = vadd.f32 %v318_v59, %v205_v58 }
  0xff   :  { %391 = vst [vmem:[%s898_s2 + $0xd0] sm:$0xff] %v476_v60 }
 0x100   :  { %479 = vtanh.f32 %v319_v61  ;;  %v160_v62 = vpop.f32.mrf.mxu0  ;;  %v273_v63 = vpop.f32.mrf.mxu1 }
 0x101   :  { %v478_v0 = vpop.eup %477  ;;  %v274_v1 = vadd.f32 %v273_v63, %v160_v62 }
 0x102   :  { %376 = vst [vmem:[%s898_s2 + $0x58] sm:$0xff] %v478_v0 }
 0x103   :  { %481 = vtanh.f32 %v274_v1 }
 0x104   :  { %v208_v2 = vpop.f32.mrf.mxu2 }
 0x105   :  { %v321_v3 = vpop.f32.mrf.mxu3 }
 0x106   :  { %v480_v4 = vpop.eup %479  ;;  %v322_v5 = vadd.f32 %v321_v3, %v208_v2 }
 0x107   :  { %392 = vst [vmem:[%s898_s2 + $0xd8] sm:$0xff] %v480_v4 }
 0x108   :  { %483 = vtanh.f32 %v322_v5  ;;  %v163_v6 = vpop.f32.mrf.mxu0  ;;  %v276_v7 = vpop.f32.mrf.mxu1 }
 0x109   :  { %v482_v8 = vpop.eup %481  ;;  %v277_v9 = vadd.f32 %v276_v7, %v163_v6 }
 0x10a   :  { %377 = vst [vmem:[%s898_s2 + $0x60] sm:$0xff] %v482_v8 }
 0x10b   :  { %485 = vtanh.f32 %v277_v9 }
 0x10c   :  { %v211_v10 = vpop.f32.mrf.mxu2 }
 0x10d   :  { %v324_v11 = vpop.f32.mrf.mxu3 }
 0x10e   :  { %v484_v12 = vpop.eup %483  ;;  %v325_v13 = vadd.f32 %v324_v11, %v211_v10 }
 0x10f   :  { %393 = vst [vmem:[%s898_s2 + $0xe0] sm:$0xff] %v484_v12 }
 0x110   :  { %487 = vtanh.f32 %v325_v13  ;;  %v166_v14 = vpop.f32.mrf.mxu0  ;;  %v279_v15 = vpop.f32.mrf.mxu1 }
 0x111   :  { %v486_v16 = vpop.eup %485  ;;  %v280_v17 = vadd.f32 %v279_v15, %v166_v14 }
 0x112   :  { %378 = vst [vmem:[%s898_s2 + $0x68] sm:$0xff] %v486_v16 }
 0x113   :  { %489 = vtanh.f32 %v280_v17 }
 0x114   :  { %v214_v18 = vpop.f32.mrf.mxu2 }
 0x115   :  { %v327_v19 = vpop.f32.mrf.mxu3 }
 0x116   :  { %v488_v20 = vpop.eup %487  ;;  %v328_v21 = vadd.f32 %v327_v19, %v214_v18 }
 0x117   :  { %394 = vst [vmem:[%s898_s2 + $0xe8] sm:$0xff] %v488_v20 }
 0x118   :  { %491 = vtanh.f32 %v328_v21  ;;  %v169_v22 = vpop.f32.mrf.mxu0  ;;  %v282_v23 = vpop.f32.mrf.mxu1 }
 0x119   :  { %v490_v24 = vpop.eup %489  ;;  %v283_v25 = vadd.f32 %v282_v23, %v169_v22 }
 0x11a   :  { %379 = vst [vmem:[%s898_s2 + $0x70] sm:$0xff] %v490_v24 }
 0x11b   :  { %493 = vtanh.f32 %v283_v25 }
 0x11c   :  { %v217_v26 = vpop.f32.mrf.mxu2 }
 0x11d   :  { %v330_v27 = vpop.f32.mrf.mxu3 }
 0x11e   :  { %v492_v28 = vpop.eup %491  ;;  %v331_v29 = vadd.f32 %v330_v27, %v217_v26 }
 0x11f   :  { %395 = vst [vmem:[%s898_s2 + $0xf0] sm:$0xff] %v492_v28 }
 0x120   :  { %495 = vtanh.f32 %v331_v29 }
 0x121   :  { %v494_v30 = vpop.eup %493 }
 0x122   :  { %380 = vst [vmem:[%s898_s2 + $0x78] sm:$0xff] %v494_v30 }
 0x126   :  { %v496_v31 = vpop.eup %495 }
 0x127   :  { %396 = vst [vmem:[%s898_s2 + $0xf8] sm:$0xff] %v496_v31 }

// kernel: cl_model_forward.11
= control target key start
LH: loop header
LB: loop body
LE: loop exit
PB: predicated region body
PF: predicated region fallthrough
CT: control target
= control target key end

     0   :  { %s402_s1 = inlined_call_operand.vmem [shape: f32[512,128], index: 1, kind: input, shape index: {}]   ;;  %s403_s2 = inlined_call_operand.vmem [shape: f32[1,128], index: 2, kind: input, shape index: {}]   ;;  %s404_s0 = inlined_call_operand.vmem [shape: f32[8,512], index: 0, kind: input, shape index: {}]   ;;  %s405_s3 = inlined_call_operand.vmem [shape: f32[8,128], index: 3, kind: output, shape index: {}]  }
   0x1   :  { %v65_v0 = vld [vmem:[%s402_s1 + $0x178] sm:$0xff]  ;;  %v64_v2 = vld [vmem:[%s402_s1 + $0x170] sm:$0xff]  ;;  %v63_v6 = vld [vmem:[%s402_s1 + $0x168] sm:$0xff] }
   0x2   :  { %v33_v1 = vld [vmem:[%s402_s1 + $0x78] sm:$0xff]  ;;  %126 = vmatpush.msra.mxu2 %v65_v0  ;;  %v32_v4 = vld [vmem:[%s402_s1 + $0x70] sm:$0xff]  ;;  %v31_v8 = vld [vmem:[%s402_s1 + $0x68] sm:$0xff] }
   0x3   :  { %86 = vmatpush.msra.mxu0 %v33_v1  ;;  %v81_v3 = vld [vmem:[%s402_s1 + $0x1f8] sm:$0xff]  ;;  %v80_v7 = vld [vmem:[%s402_s1 + $0x1f0] sm:$0xff]  ;;  %v79_v10 = vld [vmem:[%s402_s1 + $0x1e8] sm:$0xff] }
   0x4   :  { %v49_v5 = vld [vmem:[%s402_s1 + $0xf8] sm:$0xff]  ;;  %146 = vmatpush.msra.mxu3 %v81_v3  ;;  %127 = vmatpush.msra.mxu2 %v64_v2  ;;  %v48_v9 = vld [vmem:[%s402_s1 + $0xf0] sm:$0xff]  ;;  %v62_v11 = vld [vmem:[%s402_s1 + $0x160] sm:$0xff] }
   0x5   :  { %106 = vmatpush.msra.mxu1 %v49_v5  ;;  %87 = vmatpush.msra.mxu0 %v32_v4  ;;  %v30_v12 = vld [vmem:[%s402_s1 + $0x60] sm:$0xff]  ;;  %v47_v13 = vld [vmem:[%s402_s1 + $0xe8] sm:$0xff]  ;;  %v61_v16 = vld [vmem:[%s402_s1 + $0x158] sm:$0xff] }
   0x6   :  { %147 = vmatpush.msra.mxu3 %v80_v7  ;;  %128 = vmatpush.msra.mxu2 %v63_v6  ;;  %v78_v14 = vld [vmem:[%s402_s1 + $0x1e0] sm:$0xff]  ;;  %v29_v17 = vld [vmem:[%s402_s1 + $0x58] sm:$0xff]  ;;  %v60_v20 = vld [vmem:[%s402_s1 + $0x150] sm:$0xff] }
   0x7   :  { %107 = vmatpush.msra.mxu1 %v48_v9  ;;  %88 = vmatpush.msra.mxu0 %v31_v8  ;;  %v46_v15 = vld [vmem:[%s402_s1 + $0xe0] sm:$0xff]  ;;  %v77_v18 = vld [vmem:[%s402_s1 + $0x1d8] sm:$0xff]  ;;  %v28_v21 = vld [vmem:[%s402_s1 + $0x50] sm:$0xff] }
   0x8   :  { %148 = vmatpush.msra.mxu3 %v79_v10  ;;  %129 = vmatpush.msra.mxu2 %v62_v11  ;;  %v45_v19 = vld [vmem:[%s402_s1 + $0xd8] sm:$0xff]  ;;  %v76_v22 = vld [vmem:[%s402_s1 + $0x1d0] sm:$0xff]  ;;  %v59_v24 = vld [vmem:[%s402_s1 + $0x148] sm:$0xff] }
   0x9   :  { %108 = vmatpush.msra.mxu1 %v47_v13  ;;  %89 = vmatpush.msra.mxu0 %v30_v12  ;;  %v44_v23 = vld [vmem:[%s402_s1 + $0xd0] sm:$0xff]  ;;  %v27_v25 = vld [vmem:[%s402_s1 + $0x48] sm:$0xff]  ;;  %v58_v28 = vld [vmem:[%s402_s1 + $0x140] sm:$0xff] }
   0xa   :  { %149 = vmatpush.msra.mxu3 %v78_v14  ;;  %130 = vmatpush.msra.mxu2 %v61_v16  ;;  %v75_v26 = vld [vmem:[%s402_s1 + $0x1c8] sm:$0xff]  ;;  %v26_v29 = vld [vmem:[%s402_s1 + $0x40] sm:$0xff]  ;;  %v57_v32 = vld [vmem:[%s402_s1 + $0x138] sm:$0xff] }
   0xb   :  { %109 = vmatpush.msra.mxu1 %v46_v15  ;;  %90 = vmatpush.msra.mxu0 %v29_v17  ;;  %v43_v27 = vld [vmem:[%s402_s1 + $0xc8] sm:$0xff]  ;;  %v74_v30 = vld [vmem:[%s402_s1 + $0x1c0] sm:$0xff]  ;;  %v25_v33 = vld [vmem:[%s402_s1 + $0x38] sm:$0xff] }
   0xc   :  { %150 = vmatpush.msra.mxu3 %v77_v18  ;;  %131 = vmatpush.msra.mxu2 %v60_v20  ;;  %v42_v31 = vld [vmem:[%s402_s1 + $0xc0] sm:$0xff]  ;;  %v73_v34 = vld [vmem:[%s402_s1 + $0x1b8] sm:$0xff]  ;;  %v56_v36 = vld [vmem:[%s402_s1 + $0x130] sm:$0xff] }
   0xd   :  { %110 = vmatpush.msra.mxu1 %v45_v19  ;;  %91 = vmatpush.msra.mxu0 %v28_v21  ;;  %v41_v35 = vld [vmem:[%s402_s1 + $0xb8] sm:$0xff]  ;;  %v24_v37 = vld [vmem:[%s402_s1 + $0x30] sm:$0xff]  ;;  %v55_v40 = vld [vmem:[%s402_s1 + $0x128] sm:$0xff] }
   0xe   :  { %151 = vmatpush.msra.mxu3 %v76_v22  ;;  %132 = vmatpush.msra.mxu2 %v59_v24  ;;  %v72_v38 = vld [vmem:[%s402_s1 + $0x1b0] sm:$0xff]  ;;  %v23_v41 = vld [vmem:[%s402_s1 + $0x28] sm:$0xff]  ;;  %v54_v44 = vld [vmem:[%s402_s1 + $0x120] sm:$0xff] }
   0xf   :  { %111 = vmatpush.msra.mxu1 %v44_v23  ;;  %92 = vmatpush.msra.mxu0 %v27_v25  ;;  %v40_v39 = vld [vmem:[%s402_s1 + $0xb0] sm:$0xff]  ;;  %v71_v42 = vld [vmem:[%s402_s1 + $0x1a8] sm:$0xff]  ;;  %v22_v45 = vld [vmem:[%s402_s1 + $0x20] sm:$0xff] }
  0x10   :  { %152 = vmatpush.msra.mxu3 %v75_v26  ;;  %133 = vmatpush.msra.mxu2 %v58_v28  ;;  %v39_v43 = vld [vmem:[%s402_s1 + $0xa8] sm:$0xff]  ;;  %v70_v46 = vld [vmem:[%s402_s1 + $0x1a0] sm:$0xff]  ;;  %v53_v48 = vld [vmem:[%s402_s1 + $0x118] sm:$0xff] }
  0x11   :  { %112 = vmatpush.msra.mxu1 %v43_v27  ;;  %93 = vmatpush.msra.mxu0 %v26_v29  ;;  %v38_v47 = vld [vmem:[%s402_s1 + $0xa0] sm:$0xff]  ;;  %v21_v49 = vld [vmem:[%s402_s1 + $0x18] sm:$0xff]  ;;  %v52_v52 = vld [vmem:[%s402_s1 + $0x110] sm:$0xff] }
  0x12   :  { %153 = vmatpush.msra.mxu3 %v74_v30  ;;  %134 = vmatpush.msra.mxu2 %v57_v32  ;;  %v69_v50 = vld [vmem:[%s402_s1 + $0x198] sm:$0xff]  ;;  %v20_v53 = vld [vmem:[%s402_s1 + $0x10] sm:$0xff]  ;;  %v51_v56 = vld [vmem:[%s402_s1 + $0x108] sm:$0xff] }
  0x13   :  { %113 = vmatpush.msra.mxu1 %v42_v31  ;;  %94 = vmatpush.msra.mxu0 %v25_v33  ;;  %v37_v51 = vld [vmem:[%s402_s1 + $0x98] sm:$0xff]  ;;  %v68_v54 = vld [vmem:[%s402_s1 + $0x190] sm:$0xff]  ;;  %v19_v57 = vld [vmem:[%s402_s1 + $0x8] sm:$0xff] }
  0x14   :  { %154 = vmatpush.msra.mxu3 %v73_v34  ;;  %135 = vmatpush.msra.mxu2 %v56_v36  ;;  %v36_v55 = vld [vmem:[%s402_s1 + $0x90] sm:$0xff]  ;;  %v67_v58 = vld [vmem:[%s402_s1 + $0x188] sm:$0xff]  ;;  %v50_v60 = vld [vmem:[%s402_s1 + $0x100] sm:$0xff] }
  0x15   :  { %114 = vmatpush.msra.mxu1 %v41_v35  ;;  %95 = vmatpush.msra.mxu0 %v24_v37  ;;  %v35_v59 = vld [vmem:[%s402_s1 + $0x88] sm:$0xff]  ;;  %v18_v61 = vld [vmem:[%s402_s1] sm:$0xff]  ;;  %v16_v62 = vld [vmem:[%s404_s0 + $0x10] sm:$0xff] }
  0x16   :  { %155 = vmatpush.msra.mxu3 %v72_v38  ;;  %136 = vmatpush.msra.mxu2 %v55_v40  ;;  %v66_v63 = vld [vmem:[%s402_s1 + $0x180] sm:$0xff]  ;;  %v17_v1 = vld [vmem:[%s404_s0 + $0x18] sm:$0xff]  ;;  %v15_v3 = vld [vmem:[%s404_s0 + $0x8] sm:$0xff] }
  0x17   :  { %115 = vmatpush.msra.mxu1 %v40_v39  ;;  %96 = vmatpush.msra.mxu0 %v23_v41  ;;  %v14_v0 = vld [vmem:[%s404_s0] sm:$0xff] }
  0x18   :  { %156 = vmatpush.msra.mxu3 %v71_v42  ;;  %137 = vmatpush.msra.mxu2 %v54_v44  ;;  %v34_v2 = vld [vmem:[%s402_s1 + $0x80] sm:$0xff] }
  0x19   :  { %116 = vmatpush.msra.mxu1 %v39_v43  ;;  %97 = vmatpush.msra.mxu0 %v22_v45  ;;  %v171_v4 = vld [vmem:[%s403_s2] ss:$0 sm:$0xff] }
  0x1a   :  { %157 = vmatpush.msra.mxu3 %v70_v46  ;;  %138 = vmatpush.msra.mxu2 %v53_v48 }
  0x1b   :  { %117 = vmatpush.msra.mxu1 %v38_v47  ;;  %98 = vmatpush.msra.mxu0 %v21_v49 }
  0x1c   :  { %158 = vmatpush.msra.mxu3 %v69_v50  ;;  %139 = vmatpush.msra.mxu2 %v52_v52 }
  0x1d   :  { %118 = vmatpush.msra.mxu1 %v37_v51  ;;  %99 = vmatpush.msra.mxu0 %v20_v53 }
  0x1e   :  { %159 = vmatpush.msra.mxu3 %v68_v54  ;;  %140 = vmatpush.msra.mxu2 %v51_v56 }
  0x1f   :  { %119 = vmatpush.msra.mxu1 %v36_v55  ;;  %100 = vmatpush.msra.mxu0 %v19_v57 }
  0x20   :  { %160 = vmatpush.msra.mxu3 %v67_v58  ;;  %141 = vmatpush.msra.mxu2 %v50_v60 }
  0x21   :  { %120 = vmatpush.msra.mxu1 %v35_v59  ;;  %101 = vmatpush.msra.mxu0 %v18_v61 }
  0x22   :  { %142 = vmatmul.f32.vlgmr.msra.gmra.mxu2 %v16_v62  ;;  %161 = vmatpush.msra.mxu3 %v66_v63 }
  0x23   :  { %102 = vmatmul.f32.vlgmr.msra.gmra.mxu0 %v14_v0  ;;  %162 = vmatmul.f32.vlgmr.msra.gmra.mxu3 %v17_v1 }
  0x24   :  { %121 = vmatpush.msra.mxu1 %v34_v2 }
  0x25   :  { %122 = vmatmul.f32.vlgmr.msra.gmra.mxu1 %v15_v3 }
  0xa0   :  { %v103_v5 = vpop.f32.mrf.mxu0 }
  0xa1   :  { %v104_v6 = vadd.f32 %v171_v4, %v103_v5 }
  0xa2   :  { %v123_v7 = vpop.f32.mrf.mxu1 }
  0xa3   :  { %v124_v8 = vadd.f32 %v123_v7, %v104_v6 }
  0xa5   :  { %v143_v9 = vpop.f32.mrf.mxu2 }
  0xa6   :  { %v144_v10 = vadd.f32 %v143_v9, %v124_v8  ;;  %v163_v11 = vpop.f32.mrf.mxu3 }
  0xa8   :  { %v164_v12 = vadd.f32 %v163_v11, %v144_v10 }
  0xaa   :  { %166 = vst [vmem:[%s405_s3] sm:$0xff] %v164_v12 }

</bundles_post_ra>
